<compile_context>
chip_gen: v5e
topology: v5e:2x2
jax: 0.10.0
libtpu: 0.0.40
codegen_flags: <defaults>
</compile_context>

<pallas_src>
import jax
import jax.numpy as jnp
from jax.experimental import pallas as pl
from jax.experimental.pallas import tpu as pltpu

SUBLANE = 8  # f32 sublane count


def _round_up(x, m):
    return (x + m - 1) // m * m


def policy_net_kernel(x_ref, w1_ref, b1_ref, w2_ref, b2_ref, out_ref):
    # Hidden layer: bf16 MXU matmul, f32 accumulation; bias + ReLU in f32 (VPU).
    x = x_ref[...].astype(jnp.bfloat16)
    h = jnp.dot(x, w1_ref[...], preferred_element_type=jnp.float32)
    h = jnp.maximum(h + b1_ref[...], 0.0)

    # Output layer (unpadded feature dims).
    logits = jnp.dot(h.astype(jnp.bfloat16), w2_ref[...],
                     preferred_element_type=jnp.float32)
    logits = logits + b2_ref[...]

    # Softmax over the feature axis (dim=1), numerically stabilized.
    m = jnp.max(logits, axis=-1, keepdims=True)
    e = jnp.exp(logits - m)
    denom = jnp.sum(e, axis=-1, keepdims=True)
    out_ref[...] = e / denom  # exact divide: rows sum to 1 to f32 rounding


def prepare_params(w1, b1, w2, b2):
    """Cast matmul weights to bf16; reshape biases to (1, n) f32 rows."""
    return (w1.astype(jnp.bfloat16), b1.reshape(1, -1).astype(jnp.float32),
            w2.astype(jnp.bfloat16), b2.reshape(1, -1).astype(jnp.float32))


def _pick_batch_tile(B, tile_b):
    """Batch tile: multiple of 8 sublanes, capped at tile_b; keep >= 2 tiles
    when there is enough work so v7x's two TensorCores both get a share."""
    b_ceil = _round_up(max(B, 1), SUBLANE)
    tb = _round_up(min(tile_b, b_ceil), SUBLANE)
    if b_ceil >= 2 * SUBLANE and pl.cdiv(B, tb) < 2:
        tb = _round_up(pl.cdiv(b_ceil, 2), SUBLANE)
    return max(tb, SUBLANE)


def policy_network_forward(x, w1p, b1p, w2p, b2p, *, tile_b=2048):
    """x: (B, input_size) f32; returns (B, output_size) f32 softmax probs.

    Batch many states per call (stack rollouts along B) to amortize the fixed
    per-call / per-grid-step overhead — the per-row compute here is tiny.
    """
    B, in_size = x.shape
    out_size = w2p.shape[1]

    tb = _pick_batch_tile(B, tile_b)
    grid = pl.cdiv(B, tb)  # ragged edge block allowed; OOB output rows dropped

    out = pl.pallas_call(
        policy_net_kernel,
        out_shape=jax.ShapeDtypeStruct((B, out_size), jnp.float32),
        grid=(grid,),
        in_specs=[
            pl.BlockSpec((tb, in_size), lambda i: (i, 0)),   # stream batch
            pl.BlockSpec(w1p.shape, lambda i: (0, 0)),       # weights resident
            pl.BlockSpec(b1p.shape, lambda i: (0, 0)),
            pl.BlockSpec(w2p.shape, lambda i: (0, 0)),
            pl.BlockSpec(b2p.shape, lambda i: (0, 0)),
        ],
        out_specs=pl.BlockSpec((tb, out_size), lambda i: (i, 0)),
        compiler_params=pltpu.CompilerParams(
            dimension_semantics=("parallel",),
        ),
    )(x, w1p, b1p, w2p, b2p)

    return out


def init_params(key, input_size, hidden_size, output_size):
    """Deterministic PyTorch-style init: U(-1/sqrt(fan_in), 1/sqrt(fan_in))."""
    k1, k2, k3, k4 = jax.random.split(key, 4)
    bnd1 = 1.0 / jnp.sqrt(input_size)
    bnd2 = 1.0 / jnp.sqrt(hidden_size)
    w1 = jax.random.uniform(k1, (input_size, hidden_size), jnp.float32, -bnd1, bnd1)
    b1 = jax.random.uniform(k2, (hidden_size,), jnp.float32, -bnd1, bnd1)
    w2 = jax.random.uniform(k3, (hidden_size, output_size), jnp.float32, -bnd2, bnd2)
    b2 = jax.random.uniform(k4, (output_size,), jnp.float32, -bnd2, bnd2)
    return w1, b1, w2, b2


if __name__ == "__main__":
    input_size, hidden_size, output_size = 16, 32, 8
    batch = 8

    key = jax.random.PRNGKey(0)
    kx, kp = jax.random.split(key)
    x = jax.random.normal(kx, (batch, input_size), jnp.float32)
    w1, b1, w2, b2 = init_params(kp, input_size, hidden_size, output_size)

    params = prepare_params(w1, b1, w2, b2)
    out = policy_network_forward(x, *params)
    out = jax.block_until_ready(out)
    assert out.shape == (batch, output_size)

    # Reference 1: same bf16-operand / f32-accumulate math in pure JAX
    # (tight check of the kernel itself).
    hb = jnp.maximum(
        jnp.dot(x.astype(jnp.bfloat16), w1.astype(jnp.bfloat16),
                preferred_element_type=jnp.float32) + b1, 0.0)
    lb = jnp.dot(hb.astype(jnp.bfloat16), w2.astype(jnp.bfloat16),
                 preferred_element_type=jnp.float32) + b2
    ref_bf16 = jax.nn.softmax(lb, axis=1)
    assert jnp.allclose(out, ref_bf16, atol=2e-3, rtol=2e-3)

    # Reference 2: full-f32 PyTorch-equivalent forward (semantic check; looser
    # tolerance covers bf16 matmul operands).
    ref_f32 = jax.nn.softmax(jnp.maximum(x @ w1 + b1, 0.0) @ w2 + b2, axis=1)
    assert jnp.allclose(out, ref_f32, atol=2e-2)

    # Rows sum to 1 (exact divide, f32 rounding only).
    assert jnp.allclose(jnp.sum(out, axis=1), 1.0, atol=1e-5)

    print("KERNEL_OK")
</pallas_src>

<mosaic_0001>
module attributes {stable_mosaic.version = 11 : i64} {
  func.func @policy_net_kernel(%arg0: i32, %arg1: memref<8x16xf32, #tpu.memory_space<vmem>>, %arg2: memref<16x32xbf16, #tpu.memory_space<vmem>>, %arg3: memref<1x32xf32, #tpu.memory_space<vmem>>, %arg4: memref<32x8xbf16, #tpu.memory_space<vmem>>, %arg5: memref<1x8xf32, #tpu.memory_space<vmem>>, %arg6: memref<8x8xf32, #tpu.memory_space<vmem>>) attributes {dimension_semantics = [#tpu.dimension_semantics<parallel>], iteration_bounds = array<i64: 1>, scalar_prefetch = 0 : i64, scratch_operands = 0 : i64, tpu.core_type = #tpu.core_type<tc>, window_params = [{transform_indices = @transform_0, window_bounds = array<i64: 8, 16>}, {pipeline_mode = #tpu.pipeline_mode<synchronous>, transform_indices = @transform_1, window_bounds = array<i64: 16, 32>}, {pipeline_mode = #tpu.pipeline_mode<synchronous>, transform_indices = @transform_2, window_bounds = array<i64: 1, 32>}, {pipeline_mode = #tpu.pipeline_mode<synchronous>, transform_indices = @transform_3, window_bounds = array<i64: 32, 8>}, {pipeline_mode = #tpu.pipeline_mode<synchronous>, transform_indices = @transform_4, window_bounds = array<i64: 1, 8>}, {transform_indices = @transform_5, window_bounds = array<i64: 8, 8>}]} {
    %c0 = arith.constant 0 : index
    %c0_0 = arith.constant 0 : index
    %0 = vector.load %arg1[%c0, %c0_0] : memref<8x16xf32, #tpu.memory_space<vmem>>, vector<8x16xf32>
    %1 = arith.truncf %0 : vector<8x16xf32> to vector<8x16xbf16>
    %c0_1 = arith.constant 0 : index
    %c0_2 = arith.constant 0 : index
    %2 = vector.load %arg2[%c0_1, %c0_2] : memref<16x32xbf16, #tpu.memory_space<vmem>>, vector<16x32xbf16>
    %cst = arith.constant dense<0.000000e+00> : vector<8x32xf32>
    %3 = tpu.matmul %1, %2, %cst {dimension_numbers = #tpu.dot_dimension_numbers<[1], [0], [0], [1], [0, 0, 1, 1], [], []>} : vector<8x16xbf16>, vector<16x32xbf16>, vector<8x32xf32> -> vector<8x32xf32>
    %c0_3 = arith.constant 0 : index
    %c0_4 = arith.constant 0 : index
    %4 = vector.load %arg3[%c0_3, %c0_4] : memref<1x32xf32, #tpu.memory_space<vmem>>, vector<1x32xf32>
    %5 = vector.broadcast %4 : vector<1x32xf32> to vector<8x32xf32>
    %6 = arith.addf %3, %5 : vector<8x32xf32>
    %cst_5 = arith.constant 0.000000e+00 : f32
    %7 = vector.broadcast %cst_5 : f32 to vector<8x32xf32>
    %8 = arith.maximumf %6, %7 : vector<8x32xf32>
    %9 = arith.truncf %8 : vector<8x32xf32> to vector<8x32xbf16>
    %c0_6 = arith.constant 0 : index
    %c0_7 = arith.constant 0 : index
    %10 = vector.load %arg4[%c0_6, %c0_7] : memref<32x8xbf16, #tpu.memory_space<vmem>>, vector<32x8xbf16>
    %cst_8 = arith.constant dense<0.000000e+00> : vector<8x8xf32>
    %11 = tpu.matmul %9, %10, %cst_8 {dimension_numbers = #tpu.dot_dimension_numbers<[1], [0], [0], [1], [0, 0, 1, 1], [], []>} : vector<8x32xbf16>, vector<32x8xbf16>, vector<8x8xf32> -> vector<8x8xf32>
    %c0_9 = arith.constant 0 : index
    %c0_10 = arith.constant 0 : index
    %12 = vector.load %arg5[%c0_9, %c0_10] : memref<1x8xf32, #tpu.memory_space<vmem>>, vector<1x8xf32>
    %13 = vector.broadcast %12 : vector<1x8xf32> to vector<8x8xf32>
    %14 = arith.addf %11, %13 : vector<8x8xf32>
    %cst_11 = arith.constant dense<0xFF800000> : vector<8xf32>
    %15 = vector.multi_reduction <maximumf>, %14, %cst_11 [1] : vector<8x8xf32> to vector<8xf32>
    %16 = vector.shape_cast %15 : vector<8xf32> to vector<8x1xf32>
    %17 = vector.broadcast %16 : vector<8x1xf32> to vector<8x8xf32>
    %18 = arith.subf %14, %17 : vector<8x8xf32>
    %19 = math.exp %18 : vector<8x8xf32>
    %cst_12 = arith.constant dense<0.000000e+00> : vector<8xf32>
    %20 = vector.multi_reduction <add>, %19, %cst_12 [1] : vector<8x8xf32> to vector<8xf32>
    %21 = vector.shape_cast %20 : vector<8xf32> to vector<8x1xf32>
    %22 = vector.broadcast %21 : vector<8x1xf32> to vector<8x8xf32>
    %23 = arith.divf %19, %22 : vector<8x8xf32>
    %c0_13 = arith.constant 0 : index
    %c0_14 = arith.constant 0 : index
    %24 = vector.load %arg6[%c0_13, %c0_14] : memref<8x8xf32, #tpu.memory_space<vmem>>, vector<8x8xf32>
    tpu.vector_store %arg6[%c0_13, %c0_14], %23 {strides = array<i32>} : memref<8x8xf32, #tpu.memory_space<vmem>>, vector<8x8xf32>,
    return
  }
  func.func @transform_0(%arg0: i32) -> (i32, i32) {
    %c0_i32 = arith.constant 0 : i32
    %c0_i32_0 = arith.constant 0 : i32
    return %arg0, %c0_i32 : i32, i32
  }
  func.func @transform_1(%arg0: i32) -> (i32, i32) {
    %c0_i32 = arith.constant 0 : i32
    %c0_i32_0 = arith.constant 0 : i32
    %c0_i32_1 = arith.constant 0 : i32
    return %c0_i32, %c0_i32_0 : i32, i32
  }
  func.func @transform_2(%arg0: i32) -> (i32, i32) {
    %c0_i32 = arith.constant 0 : i32
    %c0_i32_0 = arith.constant 0 : i32
    %c0_i32_1 = arith.constant 0 : i32
    return %c0_i32, %c0_i32_0 : i32, i32
  }
  func.func @transform_3(%arg0: i32) -> (i32, i32) {
    %c0_i32 = arith.constant 0 : i32
    %c0_i32_0 = arith.constant 0 : i32
    %c0_i32_1 = arith.constant 0 : i32
    return %c0_i32, %c0_i32_0 : i32, i32
  }
  func.func @transform_4(%arg0: i32) -> (i32, i32) {
    %c0_i32 = arith.constant 0 : i32
    %c0_i32_0 = arith.constant 0 : i32
    %c0_i32_1 = arith.constant 0 : i32
    return %c0_i32, %c0_i32_0 : i32, i32
  }
  func.func @transform_5(%arg0: i32) -> (i32, i32) {
    %c0_i32 = arith.constant 0 : i32
    %c0_i32_0 = arith.constant 0 : i32
    return %arg0, %c0_i32 : i32, i32
  }
}

</mosaic_0001>

<bundles_post_ra>
// kernel: tpu_custom_call.1
= control target key start
LH: loop header
LB: loop body
LE: loop exit
PB: predicated region body
PF: predicated region fallthrough
CT: control target
= control target key end

     0   :  { %s239_s0 = inlined_call_operand.vmem [shape: f32[8,16], index: 0, kind: input, shape index: {}]   ;;  %s240_s1 = inlined_call_operand.vmem [shape: bf16[16,32], index: 1, kind: input, shape index: {}]   ;;  %s241_s2 = inlined_call_operand.vmem [shape: f32[1,32], index: 2, kind: input, shape index: {}]   ;;  %s242_s3 = inlined_call_operand.vmem [shape: bf16[32,8], index: 3, kind: input, shape index: {}]   ;;  %s243_s4 = inlined_call_operand.vmem [shape: f32[1,8], index: 4, kind: input, shape index: {}]   ;;  %s244_s5 = inlined_call_operand.hbm [shape: f32[8,8], index: 5, kind: output, shape index: {}]  }
   0x1   :  { %v148_v0 = vld [vmem:[%s240_s1] sm:$0xff] }
   0x2   :  { %v22_v1 = vld [vmem:[%s239_s0] sm:$0xff] }
   0x3   :  { %v23_v2 = vpack.c.bf16 %v22_v1, %v22_v1 }
   0x4   :  { %10 = vsyncpa [#allocation3], 0  ;;  %47 = vmatpush.bf16.msra.mxu0 %v148_v0  ;;  %vm36_vm0 = vcmask 130048   ;;  %v150_v3 = vld [vmem:[%s242_s3 + $0x8] sm:$0xff]  ;;  %v149_v4 = vld [vmem:[%s242_s3] sm:$0xff]  ;;  %vm75_vm1 = vcmask 261120  }
   0x5   :  { %85 = vmatpush.bf16.msra.mxu1 %v150_v3  ;;  %v152_v5 = vld [vmem:[%s241_s2] ss:$0 sm:$0xff]  ;;  %vm92_vm2 = vcmask 64512   ;;  %s184_s2 = smov [#allocation2]   ;;  %s125_s29 = sshll.u32 %s244_s5, 4  ;;  %s126_s29 = int_to_ptr.hbm [resolvable:$true] %s125_s29 }
   0x6   :  { %v153_v11 = vld [vmem:[%s243_s4] ss:$0 sm:$0xff]  ;;  %s123_s3 = sshll.u32 %s184_s2, 4  ;;  %s124_s3 = int_to_ptr.vmem [resolvable:$true] %s123_s3 }
   0x7   :  { %138 = vmatmul.msk.bf16.vlgmr.msra.gmra.mxu0 %vm36_vm0, %v23_v2 }
   0x9   :  { %86 = vmatpush.bf16.msra.mxu1 %v149_v4 }
  0x84   :  { %v49_v6 = vpop.f32.mrf.mxu0 }
  0x85   :  { %v50_v7 = vadd.f32 %v152_v5, %v49_v6 }
  0x87   :  { %v53_v8 = vmax.f32 %v50_v7, 0.0 }
  0x89   :  { %v54_v9 = vpack.c.bf16 %v53_v8, %v53_v8 }
  0x8b   :  { %147 = vmatmul.msk.bf16.vlgmr.msra.gmra.mxu1 %vm75_vm1, %v54_v9 }
  0x8c   :  { %v51_v10 = vpop.f32.mrf.mxu0 }
 0x108   :  { %v88_v12 = vpop.f32.mrf.mxu1 }
 0x109   :  { %v89_v13 = vadd.f32 %v153_v11, %v88_v12 }
 0x10b   :  { %v93_v14 = vsel %vm92_vm2, %v89_v13, -inf }
 0x10c   :  { %94 = vmax.xlane.f32.xlu0 %v93_v14 }
 0x110   :  { %v90_v15 = vpop.f32.mrf.mxu1 }
 0x17f   :  { %v95_v16 = vpop.xlane.xlu0 %94 }
 0x180   :  { %v96_v17 = vsub.f32 %v89_v13, %v95_v16 }
 0x182   :  { %v97_v18 = vmul.f32 1.442695, %v96_v17 }
 0x184   :  { %154 = vpow2.f32 %v97_v18 }
 0x18a   :  { %v155_v19 = vpop.eup %154 }
 0x18b   :  { %v99_v20 = vsel %vm92_vm2, %v155_v19, 0.0 }
 0x18c   :  { %100 = vadd.xlane.f32.xlu0 %v99_v20 }
 0x1ff   :  { %v101_v21 = vpop.xlane.xlu0 %100 }
 0x200   :  { %156 = vrcp.f32 %v101_v21  ;;  %v113_v25 = vand.u32 2147483648, %v101_v21  ;;  %v111_v27 = vand.u32 2147483647, %v101_v21  ;;  %vm107_vm4 = vweird.f32 %v101_v21 }
 0x202   :  { %v114_v29 = vor.u32 1.1754944e-38, %v113_v25  ;;  %vm112_vm6 = vcmp.eq.f32.partialorder %v111_v27, 8.507059e+37 }
 0x206   :  { %v157_v22 = vpop.eup %156 }
 0x207   :  { %v103_v23 = vmul.f32 %v157_v22, %v101_v21  ;;  %vm108_vm3 = vweird.f32 %v157_v22 }
 0x208   :  { %vm109_vm5 = vmor %vm107_vm4, %vm108_vm3 }
 0x209   :  { %v104_v24 = vsub.f32 1.0, %v103_v23 }
 0x20b   :  { %v105_v26 = vmul.f32 %v157_v22, %v104_v24 }
 0x20d   :  { %v106_v28 = vadd.f32 %v157_v22, %v105_v26 }
 0x20f   :  { %v110_v30 = vsel %vm109_vm5, %v157_v22, %v106_v28 }
 0x210   :  { %v115_v31 = vsel %vm112_vm6, %v114_v29, %v110_v30 }
 0x211   :  { %v116_v32 = vmul.f32 %v155_v19, %v115_v31 }
 0x213   :  { %117 = vst.msk [vmem:[#allocation2] sm:$0xff] %vm92_vm2, %v116_v32 }
 0x214   :  { %128 = dma.vmem_to_hbm [thread:$0]  %s124_s3, 128, %s126_s29, [#allocation3]  }
 0x215   :  { %182 = dma.done.wait [#allocation3], 128  }
 0x216   :  { %183 = vsyncadd [#allocation3], 4294967168 }
 0x217   :  { %133 = vsyncpa [#allocation3], 1 }

</bundles_post_ra>
